<compile_context>
chip_gen: v6e
topology: v6e:2x2x1
jax: 0.10.0
libtpu: 0.0.40
codegen_flags: <defaults>
</compile_context>

<pallas_src>
import math

import jax
import jax.numpy as jnp
from jax.experimental import pallas as pl
from jax.experimental.pallas import tpu as pltpu

# ---- small, module-consistent sizes (original values in comments) -----------
B, T = 2, 8            # batch, music sequence length
F_IN = 32              # input_size1 (438 in the original module)
D_MID = 48             # first Linear output (768 in the original)
D = 64                 # hidden_size (512 in the original)
H = 4                  # num_heads (8 in the original)
DH = D // H            # head dim
D_FF = 128             # TransformerEncoderLayer dim_feedforward (2048 default)
N_LAYERS = 4           # Music_Encoder builds 4 TTransformer blocks
MAX_LEN = 16           # MusicPositionEmbedding max_len (360 in the original)
EPS = 1e-5             # LayerNorm eps (PyTorch default)
VEC_W = max(3 * D, D_FF)   # packed per-layer vector row width (= 192)


# ------------------------------- kernels --------------------------------------
def _layer_norm(h, g, b):
    """LayerNorm over the last axis (stats in f32), affine gamma/beta."""
    mu = jnp.mean(h, axis=-1, keepdims=True)
    var = jnp.mean(jnp.square(h - mu), axis=-1, keepdims=True)
    return (h - mu) * jax.lax.rsqrt(var + EPS) * g + b


def _prologue_kernel(music_ref, pos_ref, w1_ref, b1_ref, w2_ref, b2_ref, x0_ref):
    """music_linear (two Linears, bf16 MXU operands / f32 accum) + positional add."""
    h = jnp.dot(music_ref[...].astype(jnp.bfloat16), w1_ref[...],
                preferred_element_type=jnp.float32) + b1_ref[...]
    h = jnp.dot(h.astype(jnp.bfloat16), w2_ref[...],
                preferred_element_type=jnp.float32) + b2_ref[...]
    pos = pos_ref[...]                                   # (T, D), broadcast over batch
    for b in range(B):                                   # static, tiny
        x0_ref[b * T:(b + 1) * T, :] = h[b * T:(b + 1) * T, :] + pos


def _layers_kernel(x0_ref, mask_ref, wqkv_ref, wo_ref, wf1_ref, wf2_ref, vec_ref,
                   o_ref, x_ref, ctx_ref):
    """grid=(B, N_LAYERS): one step == one (batch element, transformer layer).
    x_ref (VMEM scratch) carries that batch element's (T, D) activation across the
    layer axis; per-layer weights arrive via BlockSpec (auto double-buffered)."""
    l = pl.program_id(1)

    @pl.when(l == 0)
    def _():
        x_ref[...] = x0_ref[...]

    x = x_ref[...]                                       # (T, D) f32

    # ---- packed per-layer vectors: one DMA instead of 8 sub-KB ones ----------
    bqkv = vec_ref[0:1, :3 * D]
    bo   = vec_ref[1:2, :D]
    g1   = vec_ref[2:3, :D]
    be1  = vec_ref[3:4, :D]
    bf1  = vec_ref[4:5, :D_FF]
    bf2  = vec_ref[5:6, :D]
    g2   = vec_ref[6:7, :D]
    be2  = vec_ref[7:8, :D]

    # ---- fused QKV projection (bf16 operands, f32 accumulation) --------------
    qkv = jnp.dot(x.astype(jnp.bfloat16), wqkv_ref[...],
                  preferred_element_type=jnp.float32) + bqkv        # (T, 3D) f32
    q = (qkv[:, 0:D] * (1.0 / math.sqrt(DH))).astype(jnp.bfloat16)
    k = qkv[:, D:2 * D].astype(jnp.bfloat16)
    v = qkv[:, 2 * D:3 * D].astype(jnp.bfloat16)
    mask = mask_ref[...]                                 # (T, T) f32 additive mask

    # ---- per-head attention; softmax stats in f32; head outputs written ------
    # ---- directly into the VMEM ctx scratch (no concat tree, no batch loop) --
    for hd in range(H):
        c0 = hd * DH
        s = jax.lax.dot_general(q[:, c0:c0 + DH], k[:, c0:c0 + DH],
                                (((1,), (1,)), ((), ())),
                                preferred_element_type=jnp.float32)  # (T, T)
        s = s + mask
        s = s - jnp.max(s, axis=-1, keepdims=True)
        p = jnp.exp(s)
        p = p * pl.reciprocal(jnp.sum(p, axis=-1, keepdims=True), approx=True)
        ctx_ref[:, c0:c0 + DH] = jnp.dot(p.astype(jnp.bfloat16), v[:, c0:c0 + DH],
                                         preferred_element_type=jnp.float32)

    # ---- output projection + post-norm residual blocks (f32 elementwise) -----
    attn = jnp.dot(ctx_ref[...].astype(jnp.bfloat16), wo_ref[...],
                   preferred_element_type=jnp.float32) + bo
    h1 = _layer_norm(x + attn, g1, be1)                  # norm1(x + attn)

    ff = jnp.maximum(jnp.dot(h1.astype(jnp.bfloat16), wf1_ref[...],
                             preferred_element_type=jnp.float32) + bf1, 0.0)
    ff = jnp.dot(ff.astype(jnp.bfloat16), wf2_ref[...],
                 preferred_element_type=jnp.float32) + bf2
    h2 = _layer_norm(h1 + ff, g2, be2)                   # norm2(h1 + ffn)

    x_ref[...] = h2                                      # carry to next layer

    # Output index_map depends only on the batch grid axis, so writing only on the
    # final layer step is safe: the block is copied back when the batch index
    # changes / at grid end, i.e. after this write.
    @pl.when(l == pl.num_programs(1) - 1)
    def _():
        o_ref[...] = h2


# ------------------------------- parameters -----------------------------------
def _uniform(key, shape, scale=0.05):
    return jax.random.uniform(key, shape, jnp.float32, -scale, scale)


def init_params(key):
    keys = jax.random.split(key, 13)
    bf16 = jnp.bfloat16
    return {
        # music_linear: Linear(F_IN -> D_MID), Linear(D_MID -> D); weights bf16
        "w1": _uniform(keys[0], (F_IN, D_MID)).astype(bf16),
        "b1": _uniform(keys[1], (1, D_MID)),
        "w2": _uniform(keys[2], (D_MID, D)).astype(bf16),
        "b2": _uniform(keys[3], (1, D)),
        # MusicPositionEmbedding: uniform(-0.1, 0.1)
        "pos": jax.random.uniform(keys[4], (MAX_LEN, D), jnp.float32, -0.1, 0.1),
        # per-layer transformer weights stacked on a leading N_LAYERS axis (bf16)
        "wqkv": _uniform(keys[5], (N_LAYERS, D, 3 * D)).astype(bf16),
        "wo":   _uniform(keys[6], (N_LAYERS, D, D)).astype(bf16),
        "wf1":  _uniform(keys[7], (N_LAYERS, D, D_FF)).astype(bf16),
        "wf2":  _uniform(keys[8], (N_LAYERS, D_FF, D)).astype(bf16),
        # small per-layer vectors (f32): biases + LayerNorm affine
        "bqkv": _uniform(keys[9], (N_LAYERS, 3 * D)),
        "bo":   _uniform(keys[10], (N_LAYERS, D)),
        "bf1":  _uniform(keys[11], (N_LAYERS, D_FF)),
        "bf2":  _uniform(keys[12], (N_LAYERS, D)),
        "g1":   jnp.ones((N_LAYERS, D), jnp.float32),
        "be1":  jnp.zeros((N_LAYERS, D), jnp.float32),
        "g2":   jnp.ones((N_LAYERS, D), jnp.float32),
        "be2":  jnp.zeros((N_LAYERS, D), jnp.float32),
    }


def _pack_vecs(params):
    """Pack the 8 small per-layer vectors into one (N_LAYERS, 8, VEC_W) tensor so a
    layer step issues a single DMA for all of them (rows are zero-padded)."""
    def row(name):
        v = params[name]
        return jnp.pad(v, ((0, 0), (0, VEC_W - v.shape[-1])))
    return jnp.stack([row("bqkv"), row("bo"), row("g1"), row("be1"),
                      row("bf1"), row("bf2"), row("g2"), row("be2")], axis=1)


# ------------------------------ forward (Pallas) -------------------------------
def music_encoder_forward(params, music, mask):
    b, t, f = music.shape
    bt = b * t
    assert (b, t, f) == (B, T, F_IN)

    # ---- prologue kernel: music_linear + positional embedding (one shot) ------
    x0 = pl.pallas_call(
        _prologue_kernel,
        out_shape=jax.ShapeDtypeStruct((bt, D), jnp.float32),
    )(music.reshape(bt, f), params["pos"][:t],
      params["w1"], params["b1"], params["w2"], params["b2"])

    vecs = _pack_vecs(params)

    def per_layer(shape):
        return pl.BlockSpec((None,) + shape, lambda bi, l: (l, 0, 0))

    grid_spec = pltpu.PrefetchScalarGridSpec(
        num_scalar_prefetch=0,
        grid=(b, N_LAYERS),                                   # batch ∥, layers carry
        in_specs=[
            pl.BlockSpec((t, D), lambda bi, l: (bi, 0)),      # x0: per-batch rows
            pl.BlockSpec((t, t), lambda bi, l: (0, 0)),       # additive attn mask
            per_layer((D, 3 * D)),                            # fused QKV weight
            per_layer((D, D)),                                # out-proj weight
            per_layer((D, D_FF)),                             # FFN linear1 weight
            per_layer((D_FF, D)),                             # FFN linear2 weight
            per_layer((8, VEC_W)),                            # packed biases/LN params
        ],
        out_specs=pl.BlockSpec((t, D), lambda bi, l: (bi, 0)),
        scratch_shapes=[pltpu.VMEM((t, D), jnp.float32),      # activation carry
                        pltpu.VMEM((t, D), jnp.float32)],     # attention ctx assembly
    )

    out = pl.pallas_call(
        _layers_kernel,
        grid_spec=grid_spec,
        out_shape=jax.ShapeDtypeStruct((bt, D), jnp.float32),
        compiler_params=pltpu.CompilerParams(
            dimension_semantics=("parallel", "arbitrary"),    # batch -> 2nd TC on v7x
            vmem_limit_bytes=32 * 1024 * 1024),               # explicit VMEM budget
    )(x0, mask, params["wqkv"], params["wo"], params["wf1"], params["wf2"], vecs)
    return out.reshape(b, t, D)


# ------------------------------ reference (pure JAX, f32) ----------------------
def _ref_ln(h, g, bta):
    mu = h.mean(-1, keepdims=True)
    var = ((h - mu) ** 2).mean(-1, keepdims=True)
    return (h - mu) / jnp.sqrt(var + EPS) * g + bta


def ref_forward(params, music, mask):
    b, t, _ = music.shape
    x = music @ params["w1"].astype(jnp.float32) + params["b1"]
    x = x @ params["w2"].astype(jnp.float32) + params["b2"]
    x = x + params["pos"][:t][None]
    for l in range(N_LAYERS):
        wqkv = params["wqkv"][l].astype(jnp.float32)
        wo = params["wo"][l].astype(jnp.float32)
        wf1 = params["wf1"][l].astype(jnp.float32)
        wf2 = params["wf2"][l].astype(jnp.float32)
        qkv = x @ wqkv + params["bqkv"][l]
        q, k, v = jnp.split(qkv, 3, axis=-1)
        q = q.reshape(b, t, H, DH).transpose(0, 2, 1, 3)
        k = k.reshape(b, t, H, DH).transpose(0, 2, 1, 3)
        v = v.reshape(b, t, H, DH).transpose(0, 2, 1, 3)
        s = jnp.einsum("bhqd,bhkd->bhqk", q, k) / math.sqrt(DH) + mask[None, None]
        a = jax.nn.softmax(s, axis=-1)
        ctx = jnp.einsum("bhqk,bhkd->bhqd", a, v).transpose(0, 2, 1, 3).reshape(b, t, D)
        ctx = ctx @ wo + params["bo"][l]
        h1 = _ref_ln(x + ctx, params["g1"][l], params["be1"][l])
        ff = jnp.maximum(h1 @ wf1 + params["bf1"][l], 0.0)
        ff = ff @ wf2 + params["bf2"][l]
        x = _ref_ln(h1 + ff, params["g2"][l], params["be2"][l])
    return x


# ----------------------------------- main --------------------------------------
if __name__ == "__main__":
    key = jax.random.PRNGKey(0)
    pkey, mkey = jax.random.split(key)
    params = init_params(pkey)
    music = jax.random.normal(mkey, (B, T, F_IN), jnp.float32)
    # float additive attention mask (PyTorch attn_mask semantics): causal here.
    mask = jnp.where(jnp.triu(jnp.ones((T, T), dtype=bool), k=1),
                     -1e9, 0.0).astype(jnp.float32)

    out = jax.jit(music_encoder_forward)(params, music, mask)
    out = jax.block_until_ready(out)

    ref = ref_forward(params, music, mask)
    assert out.shape == (B, T, D), out.shape
    assert bool(jnp.all(jnp.isfinite(out)))
    max_err = float(jnp.max(jnp.abs(out - ref)))
    # 3e-2 tolerance: bf16 MXU operands (f32 accumulation) + EUP approx reciprocal
    # vs. the pure-f32 reference.
    assert bool(jnp.allclose(out, ref, rtol=3e-2, atol=3e-2)), max_err
    print("KERNEL_OK")
</pallas_src>

<mosaic_0001>
module attributes {stable_mosaic.version = 11 : i64} {
  func.func @_prologue_kernel(%arg0: memref<16x32xf32, #tpu.memory_space<vmem>>, %arg1: memref<8x64xf32, #tpu.memory_space<vmem>>, %arg2: memref<32x48xbf16, #tpu.memory_space<vmem>>, %arg3: memref<1x48xf32, #tpu.memory_space<vmem>>, %arg4: memref<48x64xbf16, #tpu.memory_space<vmem>>, %arg5: memref<1x64xf32, #tpu.memory_space<vmem>>, %arg6: memref<16x64xf32, #tpu.memory_space<vmem>>) attributes {dimension_semantics = [], scalar_prefetch = 0 : i64, scratch_operands = 0 : i64, tpu.core_type = #tpu.core_type<tc>} {
    %c0 = arith.constant 0 : index
    %c0_0 = arith.constant 0 : index
    %0 = vector.load %arg0[%c0, %c0_0] : memref<16x32xf32, #tpu.memory_space<vmem>>, vector<16x32xf32>
    %1 = arith.truncf %0 : vector<16x32xf32> to vector<16x32xbf16>
    %c0_1 = arith.constant 0 : index
    %c0_2 = arith.constant 0 : index
    %2 = vector.load %arg2[%c0_1, %c0_2] : memref<32x48xbf16, #tpu.memory_space<vmem>>, vector<32x48xbf16>
    %cst = arith.constant dense<0.000000e+00> : vector<16x48xf32>
    %3 = tpu.matmul %1, %2, %cst {dimension_numbers = #tpu.dot_dimension_numbers<[1], [0], [0], [1], [0, 0, 1, 1], [], []>} : vector<16x32xbf16>, vector<32x48xbf16>, vector<16x48xf32> -> vector<16x48xf32>
    %c0_3 = arith.constant 0 : index
    %c0_4 = arith.constant 0 : index
    %4 = vector.load %arg3[%c0_3, %c0_4] : memref<1x48xf32, #tpu.memory_space<vmem>>, vector<1x48xf32>
    %5 = vector.broadcast %4 : vector<1x48xf32> to vector<16x48xf32>
    %6 = arith.addf %3, %5 : vector<16x48xf32>
    %7 = arith.truncf %6 : vector<16x48xf32> to vector<16x48xbf16>
    %c0_5 = arith.constant 0 : index
    %c0_6 = arith.constant 0 : index
    %8 = vector.load %arg4[%c0_5, %c0_6] : memref<48x64xbf16, #tpu.memory_space<vmem>>, vector<48x64xbf16>
    %cst_7 = arith.constant dense<0.000000e+00> : vector<16x64xf32>
    %9 = tpu.matmul %7, %8, %cst_7 {dimension_numbers = #tpu.dot_dimension_numbers<[1], [0], [0], [1], [0, 0, 1, 1], [], []>} : vector<16x48xbf16>, vector<48x64xbf16>, vector<16x64xf32> -> vector<16x64xf32>
    %c0_8 = arith.constant 0 : index
    %c0_9 = arith.constant 0 : index
    %10 = vector.load %arg5[%c0_8, %c0_9] : memref<1x64xf32, #tpu.memory_space<vmem>>, vector<1x64xf32>
    %11 = vector.broadcast %10 : vector<1x64xf32> to vector<16x64xf32>
    %12 = arith.addf %9, %11 : vector<16x64xf32>
    %c0_10 = arith.constant 0 : index
    %c0_11 = arith.constant 0 : index
    %13 = vector.load %arg1[%c0_10, %c0_11] : memref<8x64xf32, #tpu.memory_space<vmem>>, vector<8x64xf32>
    %14 = vector.extract_strided_slice %12 {offsets = [0, 0], sizes = [8, 64], strides = [1, 1]} : vector<16x64xf32> to vector<8x64xf32>
    %15 = arith.addf %14, %13 : vector<8x64xf32>
    %c0_12 = arith.constant 0 : index
    %c0_13 = arith.constant 0 : index
    %16 = vector.load %arg6[%c0_12, %c0_13] : memref<16x64xf32, #tpu.memory_space<vmem>>, vector<8x64xf32>
    tpu.vector_store %arg6[%c0_12, %c0_13], %15 {strides = array<i32>} : memref<16x64xf32, #tpu.memory_space<vmem>>, vector<8x64xf32>,
    %17 = vector.extract_strided_slice %12 {offsets = [8, 0], sizes = [8, 64], strides = [1, 1]} : vector<16x64xf32> to vector<8x64xf32>
    %18 = arith.addf %17, %13 : vector<8x64xf32>
    %c8 = arith.constant 8 : index
    %c0_14 = arith.constant 0 : index
    %19 = vector.load %arg6[%c8, %c0_14] : memref<16x64xf32, #tpu.memory_space<vmem>>, vector<8x64xf32>
    tpu.vector_store %arg6[%c8, %c0_14], %18 {strides = array<i32>} : memref<16x64xf32, #tpu.memory_space<vmem>>, vector<8x64xf32>,
    return
  }
}

module attributes {stable_mosaic.version = 11 : i64} {
  func.func @_layers_kernel(%arg0: i32, %arg1: i32, %arg2: memref<8x64xf32, #tpu.memory_space<vmem>>, %arg3: memref<8x8xf32, #tpu.memory_space<vmem>>, %arg4: memref<1x64x192xbf16, #tpu.memory_space<vmem>>, %arg5: memref<1x64x64xbf16, #tpu.memory_space<vmem>>, %arg6: memref<1x64x128xbf16, #tpu.memory_space<vmem>>, %arg7: memref<1x128x64xbf16, #tpu.memory_space<vmem>>, %arg8: memref<1x8x192xf32, #tpu.memory_space<vmem>>, %arg9: memref<8x64xf32, #tpu.memory_space<vmem>>, %arg10: memref<8x64xf32, #tpu.memory_space<vmem>>, %arg11: memref<8x64xf32, #tpu.memory_space<vmem>>) attributes {dimension_semantics = [#tpu.dimension_semantics<parallel>, #tpu.dimension_semantics<arbitrary>], iteration_bounds = array<i64: 2, 4>, scalar_prefetch = 0 : i64, scratch_operands = 2 : i64, tpu.core_type = #tpu.core_type<tc>, window_params = [{transform_indices = @transform_0, window_bounds = array<i64: 8, 64>}, {pipeline_mode = #tpu.pipeline_mode<synchronous>, transform_indices = @transform_1, window_bounds = array<i64: 8, 8>}, {transform_indices = @transform_2, window_bounds = array<i64: 1, 64, 192>}, {transform_indices = @transform_3, window_bounds = array<i64: 1, 64, 64>}, {transform_indices = @transform_4, window_bounds = array<i64: 1, 64, 128>}, {transform_indices = @transform_5, window_bounds = array<i64: 1, 128, 64>}, {transform_indices = @transform_6, window_bounds = array<i64: 1, 8, 192>}, {transform_indices = @transform_7, window_bounds = array<i64: 8, 64>}]} {
    %c0_i32 = arith.constant 0 : i32
    %0 = arith.cmpi eq, %arg1, %c0_i32 : i32
    %1 = arith.extui %0 : i1 to i32
    %c0_i32_0 = arith.constant 0 : i32
    %2 = arith.cmpi ne, %1, %c0_i32_0 : i32
    scf.if %2 {
      %c0_74 = arith.constant 0 : index
      %c0_75 = arith.constant 0 : index
      %178 = vector.load %arg2[%c0_74, %c0_75] : memref<8x64xf32, #tpu.memory_space<vmem>>, vector<8x64xf32>
      %c0_76 = arith.constant 0 : index
      %c0_77 = arith.constant 0 : index
      %179 = vector.load %arg10[%c0_76, %c0_77] : memref<8x64xf32, #tpu.memory_space<vmem>>, vector<8x64xf32>
      tpu.vector_store %arg10[%c0_76, %c0_77], %178 {strides = array<i32>} : memref<8x64xf32, #tpu.memory_space<vmem>>, vector<8x64xf32>,
    } else {
    }
    %c0 = arith.constant 0 : index
    %c0_1 = arith.constant 0 : index
    %3 = vector.load %arg10[%c0, %c0_1] : memref<8x64xf32, #tpu.memory_space<vmem>>, vector<8x64xf32>
    %c0_2 = arith.constant 0 : index
    %c0_3 = arith.constant 0 : index
    %c0_4 = arith.constant 0 : index
    %4 = vector.load %arg8[%c0_2, %c0_3, %c0_4] : memref<1x8x192xf32, #tpu.memory_space<vmem>>, vector<1x1x192xf32>
    %5 = vector.shape_cast %4 : vector<1x1x192xf32> to vector<1x192xf32>
    %c0_5 = arith.constant 0 : index
    %c1 = arith.constant 1 : index
    %c0_6 = arith.constant 0 : index
    %6 = vector.load %arg8[%c0_5, %c1, %c0_6] : memref<1x8x192xf32, #tpu.memory_space<vmem>>, vector<1x1x64xf32>
    %7 = vector.shape_cast %6 : vector<1x1x64xf32> to vector<1x64xf32>
    %c0_7 = arith.constant 0 : index
    %c2 = arith.constant 2 : index
    %c0_8 = arith.constant 0 : index
    %8 = vector.load %arg8[%c0_7, %c2, %c0_8] : memref<1x8x192xf32, #tpu.memory_space<vmem>>, vector<1x1x64xf32>
    %9 = vector.shape_cast %8 : vector<1x1x64xf32> to vector<1x64xf32>
    %c0_9 = arith.constant 0 : index
    %c3 = arith.constant 3 : index
    %c0_10 = arith.constant 0 : index
    %10 = vector.load %arg8[%c0_9, %c3, %c0_10] : memref<1x8x192xf32, #tpu.memory_space<vmem>>, vector<1x1x64xf32>
    %11 = vector.shape_cast %10 : vector<1x1x64xf32> to vector<1x64xf32>
    %c0_11 = arith.constant 0 : index
    %c4 = arith.constant 4 : index
    %c0_12 = arith.constant 0 : index
    %12 = vector.load %arg8[%c0_11, %c4, %c0_12] : memref<1x8x192xf32, #tpu.memory_space<vmem>>, vector<1x1x128xf32>
    %13 = vector.shape_cast %12 : vector<1x1x128xf32> to vector<1x128xf32>
    %c0_13 = arith.constant 0 : index
    %c5 = arith.constant 5 : index
    %c0_14 = arith.constant 0 : index
    %14 = vector.load %arg8[%c0_13, %c5, %c0_14] : memref<1x8x192xf32, #tpu.memory_space<vmem>>, vector<1x1x64xf32>
    %15 = vector.shape_cast %14 : vector<1x1x64xf32> to vector<1x64xf32>
    %c0_15 = arith.constant 0 : index
    %c6 = arith.constant 6 : index
    %c0_16 = arith.constant 0 : index
    %16 = vector.load %arg8[%c0_15, %c6, %c0_16] : memref<1x8x192xf32, #tpu.memory_space<vmem>>, vector<1x1x64xf32>
    %17 = vector.shape_cast %16 : vector<1x1x64xf32> to vector<1x64xf32>
    %c0_17 = arith.constant 0 : index
    %c7 = arith.constant 7 : index
    %c0_18 = arith.constant 0 : index
    %18 = vector.load %arg8[%c0_17, %c7, %c0_18] : memref<1x8x192xf32, #tpu.memory_space<vmem>>, vector<1x1x64xf32>
    %19 = vector.shape_cast %18 : vector<1x1x64xf32> to vector<1x64xf32>
    %20 = arith.truncf %3 : vector<8x64xf32> to vector<8x64xbf16>
    %c0_19 = arith.constant 0 : index
    %c0_20 = arith.constant 0 : index
    %c0_21 = arith.constant 0 : index
    %21 = vector.load %arg4[%c0_19, %c0_20, %c0_21] : memref<1x64x192xbf16, #tpu.memory_space<vmem>>, vector<1x64x192xbf16>
    %22 = vector.shape_cast %21 : vector<1x64x192xbf16> to vector<64x192xbf16>
    %cst = arith.constant dense<0.000000e+00> : vector<8x192xf32>
    %23 = tpu.matmul %20, %22, %cst {dimension_numbers = #tpu.dot_dimension_numbers<[1], [0], [0], [1], [0, 0, 1, 1], [], []>} : vector<8x64xbf16>, vector<64x192xbf16>, vector<8x192xf32> -> vector<8x192xf32>
    %24 = vector.broadcast %5 : vector<1x192xf32> to vector<8x192xf32>
    %25 = arith.addf %23, %24 : vector<8x192xf32>
    %26 = vector.extract_strided_slice %25 {offsets = [0, 0], sizes = [8, 64], strides = [1, 1]} : vector<8x192xf32> to vector<8x64xf32>
    %cst_22 = arith.constant 2.500000e-01 : f32
    %27 = vector.broadcast %cst_22 : f32 to vector<8x64xf32>
    %28 = arith.mulf %26, %27 : vector<8x64xf32>
    %29 = arith.truncf %28 : vector<8x64xf32> to vector<8x64xbf16>
    %30 = vector.extract_strided_slice %25 {offsets = [0, 64], sizes = [8, 64], strides = [1, 1]} : vector<8x192xf32> to vector<8x64xf32>
    %31 = arith.truncf %30 : vector<8x64xf32> to vector<8x64xbf16>
    %32 = vector.extract_strided_slice %25 {offsets = [0, 128], sizes = [8, 64], strides = [1, 1]} : vector<8x192xf32> to vector<8x64xf32>
    %33 = arith.truncf %32 : vector<8x64xf32> to vector<8x64xbf16>
    %c0_23 = arith.constant 0 : index
    %c0_24 = arith.constant 0 : index
    %34 = vector.load %arg3[%c0_23, %c0_24] : memref<8x8xf32, #tpu.memory_space<vmem>>, vector<8x8xf32>
    %35 = vector.extract_strided_slice %29 {offsets = [0, 0], sizes = [8, 16], strides = [1, 1]} : vector<8x64xbf16> to vector<8x16xbf16>
    %36 = vector.extract_strided_slice %31 {offsets = [0, 0], sizes = [8, 16], strides = [1, 1]} : vector<8x64xbf16> to vector<8x16xbf16>
    %cst_25 = arith.constant dense<0.000000e+00> : vector<8x8xf32>
    %37 = tpu.matmul %35, %36, %cst_25 {dimension_numbers = #tpu.dot_dimension_numbers<[1], [1], [0], [0], [0, 0, 1, 0], [], []>} : vector<8x16xbf16>, vector<8x16xbf16>, vector<8x8xf32> -> vector<8x8xf32>
    %38 = arith.addf %37, %34 : vector<8x8xf32>
    %cst_26 = arith.constant dense<0xFF800000> : vector<8xf32>
    %39 = vector.multi_reduction <maximumf>, %38, %cst_26 [1] : vector<8x8xf32> to vector<8xf32>
    %40 = vector.shape_cast %39 : vector<8xf32> to vector<8x1xf32>
    %41 = vector.broadcast %40 : vector<8x1xf32> to vector<8x8xf32>
    %42 = arith.subf %38, %41 : vector<8x8xf32>
    %43 = math.exp %42 : vector<8x8xf32>
    %cst_27 = arith.constant dense<0.000000e+00> : vector<8xf32>
    %44 = vector.multi_reduction <add>, %43, %cst_27 [1] : vector<8x8xf32> to vector<8xf32>
    %45 = vector.shape_cast %44 : vector<8xf32> to vector<8x1xf32>
    %46 = tpu.reciprocal %45 {approx = true} : vector<8x1xf32> -> vector<8x1xf32>
    %47 = vector.broadcast %46 : vector<8x1xf32> to vector<8x8xf32>
    %48 = arith.mulf %43, %47 : vector<8x8xf32>
    %49 = arith.truncf %48 : vector<8x8xf32> to vector<8x8xbf16>
    %50 = vector.extract_strided_slice %33 {offsets = [0, 0], sizes = [8, 16], strides = [1, 1]} : vector<8x64xbf16> to vector<8x16xbf16>
    %cst_28 = arith.constant dense<0.000000e+00> : vector<8x16xf32>
    %51 = tpu.matmul %49, %50, %cst_28 {dimension_numbers = #tpu.dot_dimension_numbers<[1], [0], [0], [1], [0, 0, 1, 1], [], []>} : vector<8x8xbf16>, vector<8x16xbf16>, vector<8x16xf32> -> vector<8x16xf32>
    %c0_29 = arith.constant 0 : index
    %c0_30 = arith.constant 0 : index
    %52 = vector.load %arg11[%c0_29, %c0_30] : memref<8x64xf32, #tpu.memory_space<vmem>>, vector<8x16xf32>
    tpu.vector_store %arg11[%c0_29, %c0_30], %51 {strides = array<i32>} : memref<8x64xf32, #tpu.memory_space<vmem>>, vector<8x16xf32>,
    %53 = vector.extract_strided_slice %29 {offsets = [0, 16], sizes = [8, 16], strides = [1, 1]} : vector<8x64xbf16> to vector<8x16xbf16>
    %54 = vector.extract_strided_slice %31 {offsets = [0, 16], sizes = [8, 16], strides = [1, 1]} : vector<8x64xbf16> to vector<8x16xbf16>
    %cst_31 = arith.constant dense<0.000000e+00> : vector<8x8xf32>
    %55 = tpu.matmul %53, %54, %cst_31 {dimension_numbers = #tpu.dot_dimension_numbers<[1], [1], [0], [0], [0, 0, 1, 0], [], []>} : vector<8x16xbf16>, vector<8x16xbf16>, vector<8x8xf32> -> vector<8x8xf32>
    %56 = arith.addf %55, %34 : vector<8x8xf32>
    %cst_32 = arith.constant dense<0xFF800000> : vector<8xf32>
    %57 = vector.multi_reduction <maximumf>, %56, %cst_32 [1] : vector<8x8xf32> to vector<8xf32>
    %58 = vector.shape_cast %57 : vector<8xf32> to vector<8x1xf32>
    %59 = vector.broadcast %58 : vector<8x1xf32> to vector<8x8xf32>
    %60 = arith.subf %56, %59 : vector<8x8xf32>
    %61 = math.exp %60 : vector<8x8xf32>
    %cst_33 = arith.constant dense<0.000000e+00> : vector<8xf32>
    %62 = vector.multi_reduction <add>, %61, %cst_33 [1] : vector<8x8xf32> to vector<8xf32>
    %63 = vector.shape_cast %62 : vector<8xf32> to vector<8x1xf32>
    %64 = tpu.reciprocal %63 {approx = true} : vector<8x1xf32> -> vector<8x1xf32>
    %65 = vector.broadcast %64 : vector<8x1xf32> to vector<8x8xf32>
    %66 = arith.mulf %61, %65 : vector<8x8xf32>
    %67 = arith.truncf %66 : vector<8x8xf32> to vector<8x8xbf16>
    %68 = vector.extract_strided_slice %33 {offsets = [0, 16], sizes = [8, 16], strides = [1, 1]} : vector<8x64xbf16> to vector<8x16xbf16>
    %cst_34 = arith.constant dense<0.000000e+00> : vector<8x16xf32>
    %69 = tpu.matmul %67, %68, %cst_34 {dimension_numbers = #tpu.dot_dimension_numbers<[1], [0], [0], [1], [0, 0, 1, 1], [], []>} : vector<8x8xbf16>, vector<8x16xbf16>, vector<8x16xf32> -> vector<8x16xf32>
    %c0_35 = arith.constant 0 : index
    %c16 = arith.constant 16 : index
    %70 = vector.load %arg11[%c0_35, %c16] : memref<8x64xf32, #tpu.memory_space<vmem>>, vector<8x16xf32>
    tpu.vector_store %arg11[%c0_35, %c16], %69 {strides = array<i32>} : memref<8x64xf32, #tpu.memory_space<vmem>>, vector<8x16xf32>,
    %71 = vector.extract_strided_slice %29 {offsets = [0, 32], sizes = [8, 16], strides = [1, 1]} : vector<8x64xbf16> to vector<8x16xbf16>
    %72 = vector.extract_strided_slice %31 {offsets = [0, 32], sizes = [8, 16], strides = [1, 1]} : vector<8x64xbf16> to vector<8x16xbf16>
    %cst_36 = arith.constant dense<0.000000e+00> : vector<8x8xf32>
    %73 = tpu.matmul %71, %72, %cst_36 {dimension_numbers = #tpu.dot_dimension_numbers<[1], [1], [0], [0], [0, 0, 1, 0], [], []>} : vector<8x16xbf16>, vector<8x16xbf16>, vector<8x8xf32> -> vector<8x8xf32>
    %74 = arith.addf %73, %34 : vector<8x8xf32>
    %cst_37 = arith.constant dense<0xFF800000> : vector<8xf32>
    %75 = vector.multi_reduction <maximumf>, %74, %cst_37 [1] : vector<8x8xf32> to vector<8xf32>
    %76 = vector.shape_cast %75 : vector<8xf32> to vector<8x1xf32>
    %77 = vector.broadcast %76 : vector<8x1xf32> to vector<8x8xf32>
    %78 = arith.subf %74, %77 : vector<8x8xf32>
    %79 = math.exp %78 : vector<8x8xf32>
    %cst_38 = arith.constant dense<0.000000e+00> : vector<8xf32>
    %80 = vector.multi_reduction <add>, %79, %cst_38 [1] : vector<8x8xf32> to vector<8xf32>
    %81 = vector.shape_cast %80 : vector<8xf32> to vector<8x1xf32>
    %82 = tpu.reciprocal %81 {approx = true} : vector<8x1xf32> -> vector<8x1xf32>
    %83 = vector.broadcast %82 : vector<8x1xf32> to vector<8x8xf32>
    %84 = arith.mulf %79, %83 : vector<8x8xf32>
    %85 = arith.truncf %84 : vector<8x8xf32> to vector<8x8xbf16>
    %86 = vector.extract_strided_slice %33 {offsets = [0, 32], sizes = [8, 16], strides = [1, 1]} : vector<8x64xbf16> to vector<8x16xbf16>
    %cst_39 = arith.constant dense<0.000000e+00> : vector<8x16xf32>
    %87 = tpu.matmul %85, %86, %cst_39 {dimension_numbers = #tpu.dot_dimension_numbers<[1], [0], [0], [1], [0, 0, 1, 1], [], []>} : vector<8x8xbf16>, vector<8x16xbf16>, vector<8x16xf32> -> vector<8x16xf32>
    %c0_40 = arith.constant 0 : index
    %c32 = arith.constant 32 : index
    %88 = vector.load %arg11[%c0_40, %c32] : memref<8x64xf32, #tpu.memory_space<vmem>>, vector<8x16xf32>
    tpu.vector_store %arg11[%c0_40, %c32], %87 {strides = array<i32>} : memref<8x64xf32, #tpu.memory_space<vmem>>, vector<8x16xf32>,
    %89 = vector.extract_strided_slice %29 {offsets = [0, 48], sizes = [8, 16], strides = [1, 1]} : vector<8x64xbf16> to vector<8x16xbf16>
    %90 = vector.extract_strided_slice %31 {offsets = [0, 48], sizes = [8, 16], strides = [1, 1]} : vector<8x64xbf16> to vector<8x16xbf16>
    %cst_41 = arith.constant dense<0.000000e+00> : vector<8x8xf32>
    %91 = tpu.matmul %89, %90, %cst_41 {dimension_numbers = #tpu.dot_dimension_numbers<[1], [1], [0], [0], [0, 0, 1, 0], [], []>} : vector<8x16xbf16>, vector<8x16xbf16>, vector<8x8xf32> -> vector<8x8xf32>
    %92 = arith.addf %91, %34 : vector<8x8xf32>
    %cst_42 = arith.constant dense<0xFF800000> : vector<8xf32>
    %93 = vector.multi_reduction <maximumf>, %92, %cst_42 [1] : vector<8x8xf32> to vector<8xf32>
    %94 = vector.shape_cast %93 : vector<8xf32> to vector<8x1xf32>
    %95 = vector.broadcast %94 : vector<8x1xf32> to vector<8x8xf32>
    %96 = arith.subf %92, %95 : vector<8x8xf32>
    %97 = math.exp %96 : vector<8x8xf32>
    %cst_43 = arith.constant dense<0.000000e+00> : vector<8xf32>
    %98 = vector.multi_reduction <add>, %97, %cst_43 [1] : vector<8x8xf32> to vector<8xf32>
    %99 = vector.shape_cast %98 : vector<8xf32> to vector<8x1xf32>
    %100 = tpu.reciprocal %99 {approx = true} : vector<8x1xf32> -> vector<8x1xf32>
    %101 = vector.broadcast %100 : vector<8x1xf32> to vector<8x8xf32>
    %102 = arith.mulf %97, %101 : vector<8x8xf32>
    %103 = arith.truncf %102 : vector<8x8xf32> to vector<8x8xbf16>
    %104 = vector.extract_strided_slice %33 {offsets = [0, 48], sizes = [8, 16], strides = [1, 1]} : vector<8x64xbf16> to vector<8x16xbf16>
    %cst_44 = arith.constant dense<0.000000e+00> : vector<8x16xf32>
    %105 = tpu.matmul %103, %104, %cst_44 {dimension_numbers = #tpu.dot_dimension_numbers<[1], [0], [0], [1], [0, 0, 1, 1], [], []>} : vector<8x8xbf16>, vector<8x16xbf16>, vector<8x16xf32> -> vector<8x16xf32>
    %c0_45 = arith.constant 0 : index
    %c48 = arith.constant 48 : index
    %106 = vector.load %arg11[%c0_45, %c48] : memref<8x64xf32, #tpu.memory_space<vmem>>, vector<8x16xf32>
    tpu.vector_store %arg11[%c0_45, %c48], %105 {strides = array<i32>} : memref<8x64xf32, #tpu.memory_space<vmem>>, vector<8x16xf32>,
    %c0_46 = arith.constant 0 : index
    %c0_47 = arith.constant 0 : index
    %107 = vector.load %arg11[%c0_46, %c0_47] : memref<8x64xf32, #tpu.memory_space<vmem>>, vector<8x64xf32>
    %108 = arith.truncf %107 : vector<8x64xf32> to vector<8x64xbf16>
    %c0_48 = arith.constant 0 : index
    %c0_49 = arith.constant 0 : index
    %c0_50 = arith.constant 0 : index
    %109 = vector.load %arg5[%c0_48, %c0_49, %c0_50] : memref<1x64x64xbf16, #tpu.memory_space<vmem>>, vector<1x64x64xbf16>
    %110 = vector.shape_cast %109 : vector<1x64x64xbf16> to vector<64x64xbf16>
    %cst_51 = arith.constant dense<0.000000e+00> : vector<8x64xf32>
    %111 = tpu.matmul %108, %110, %cst_51 {dimension_numbers = #tpu.dot_dimension_numbers<[1], [0], [0], [1], [0, 0, 1, 1], [], []>} : vector<8x64xbf16>, vector<64x64xbf16>, vector<8x64xf32> -> vector<8x64xf32>
    %112 = vector.broadcast %7 : vector<1x64xf32> to vector<8x64xf32>
    %113 = arith.addf %111, %112 : vector<8x64xf32>
    %114 = arith.addf %3, %113 : vector<8x64xf32>
    %cst_52 = arith.constant dense<0.000000e+00> : vector<8xf32>
    %115 = vector.multi_reduction <add>, %114, %cst_52 [1] : vector<8x64xf32> to vector<8xf32>
    %116 = vector.shape_cast %115 : vector<8xf32> to vector<8x1xf32>
    %cst_53 = arith.constant 6.400000e+01 : f32
    %117 = vector.broadcast %cst_53 : f32 to vector<8x1xf32>
    %118 = arith.divf %116, %117 : vector<8x1xf32>
    %119 = vector.broadcast %118 : vector<8x1xf32> to vector<8x64xf32>
    %120 = arith.subf %114, %119 : vector<8x64xf32>
    %121 = arith.mulf %120, %120 : vector<8x64xf32>
    %cst_54 = arith.constant dense<0.000000e+00> : vector<8xf32>
    %122 = vector.multi_reduction <add>, %121, %cst_54 [1] : vector<8x64xf32> to vector<8xf32>
    %123 = vector.shape_cast %122 : vector<8xf32> to vector<8x1xf32>
    %cst_55 = arith.constant 6.400000e+01 : f32
    %124 = vector.broadcast %cst_55 : f32 to vector<8x1xf32>
    %125 = arith.divf %123, %124 : vector<8x1xf32>
    %126 = vector.broadcast %118 : vector<8x1xf32> to vector<8x64xf32>
    %127 = arith.subf %114, %126 : vector<8x64xf32>
    %cst_56 = arith.constant 9.99999974E-6 : f32
    %128 = vector.broadcast %cst_56 : f32 to vector<8x1xf32>
    %129 = arith.addf %125, %128 : vector<8x1xf32>
    %130 = math.rsqrt %129 : vector<8x1xf32>
    %131 = vector.broadcast %130 : vector<8x1xf32> to vector<8x64xf32>
    %132 = arith.mulf %127, %131 : vector<8x64xf32>
    %133 = vector.broadcast %9 : vector<1x64xf32> to vector<8x64xf32>
    %134 = arith.mulf %132, %133 : vector<8x64xf32>
    %135 = vector.broadcast %11 : vector<1x64xf32> to vector<8x64xf32>
    %136 = arith.addf %134, %135 : vector<8x64xf32>
    %137 = arith.truncf %136 : vector<8x64xf32> to vector<8x64xbf16>
    %c0_57 = arith.constant 0 : index
    %c0_58 = arith.constant 0 : index
    %c0_59 = arith.constant 0 : index
    %138 = vector.load %arg6[%c0_57, %c0_58, %c0_59] : memref<1x64x128xbf16, #tpu.memory_space<vmem>>, vector<1x64x128xbf16>
    %139 = vector.shape_cast %138 : vector<1x64x128xbf16> to vector<64x128xbf16>
    %cst_60 = arith.constant dense<0.000000e+00> : vector<8x128xf32>
    %140 = tpu.matmul %137, %139, %cst_60 {dimension_numbers = #tpu.dot_dimension_numbers<[1], [0], [0], [1], [0, 0, 1, 1], [], []>} : vector<8x64xbf16>, vector<64x128xbf16>, vector<8x128xf32> -> vector<8x128xf32>
    %141 = vector.broadcast %13 : vector<1x128xf32> to vector<8x128xf32>
    %142 = arith.addf %140, %141 : vector<8x128xf32>
    %cst_61 = arith.constant 0.000000e+00 : f32
    %143 = vector.broadcast %cst_61 : f32 to vector<8x128xf32>
    %144 = arith.maximumf %142, %143 : vector<8x128xf32>
    %145 = arith.truncf %144 : vector<8x128xf32> to vector<8x128xbf16>
    %c0_62 = arith.constant 0 : index
    %c0_63 = arith.constant 0 : index
    %c0_64 = arith.constant 0 : index
    %146 = vector.load %arg7[%c0_62, %c0_63, %c0_64] : memref<1x128x64xbf16, #tpu.memory_space<vmem>>, vector<1x128x64xbf16>
    %147 = vector.shape_cast %146 : vector<1x128x64xbf16> to vector<128x64xbf16>
    %cst_65 = arith.constant dense<0.000000e+00> : vector<8x64xf32>
    %148 = tpu.matmul %145, %147, %cst_65 {dimension_numbers = #tpu.dot_dimension_numbers<[1], [0], [0], [1], [0, 0, 1, 1], [], []>} : vector<8x128xbf16>, vector<128x64xbf16>, vector<8x64xf32> -> vector<8x64xf32>
    %149 = vector.broadcast %15 : vector<1x64xf32> to vector<8x64xf32>
    %150 = arith.addf %148, %149 : vector<8x64xf32>
    %151 = arith.addf %136, %150 : vector<8x64xf32>
    %cst_66 = arith.constant dense<0.000000e+00> : vector<8xf32>
    %152 = vector.multi_reduction <add>, %151, %cst_66 [1] : vector<8x64xf32> to vector<8xf32>
    %153 = vector.shape_cast %152 : vector<8xf32> to vector<8x1xf32>
    %cst_67 = arith.constant 6.400000e+01 : f32
    %154 = vector.broadcast %cst_67 : f32 to vector<8x1xf32>
    %155 = arith.divf %153, %154 : vector<8x1xf32>
    %156 = vector.broadcast %155 : vector<8x1xf32> to vector<8x64xf32>
    %157 = arith.subf %151, %156 : vector<8x64xf32>
    %158 = arith.mulf %157, %157 : vector<8x64xf32>
    %cst_68 = arith.constant dense<0.000000e+00> : vector<8xf32>
    %159 = vector.multi_reduction <add>, %158, %cst_68 [1] : vector<8x64xf32> to vector<8xf32>
    %160 = vector.shape_cast %159 : vector<8xf32> to vector<8x1xf32>
    %cst_69 = arith.constant 6.400000e+01 : f32
    %161 = vector.broadcast %cst_69 : f32 to vector<8x1xf32>
    %162 = arith.divf %160, %161 : vector<8x1xf32>
    %163 = vector.broadcast %155 : vector<8x1xf32> to vector<8x64xf32>
    %164 = arith.subf %151, %163 : vector<8x64xf32>
    %cst_70 = arith.constant 9.99999974E-6 : f32
    %165 = vector.broadcast %cst_70 : f32 to vector<8x1xf32>
    %166 = arith.addf %162, %165 : vector<8x1xf32>
    %167 = math.rsqrt %166 : vector<8x1xf32>
    %168 = vector.broadcast %167 : vector<8x1xf32> to vector<8x64xf32>
    %169 = arith.mulf %164, %168 : vector<8x64xf32>
    %170 = vector.broadcast %17 : vector<1x64xf32> to vector<8x64xf32>
    %171 = arith.mulf %169, %170 : vector<8x64xf32>
    %172 = vector.broadcast %19 : vector<1x64xf32> to vector<8x64xf32>
    %173 = arith.addf %171, %172 : vector<8x64xf32>
    %c0_71 = arith.constant 0 : index
    %c0_72 = arith.constant 0 : index
    %174 = vector.load %arg10[%c0_71, %c0_72] : memref<8x64xf32, #tpu.memory_space<vmem>>, vector<8x64xf32>
    tpu.vector_store %arg10[%c0_71, %c0_72], %173 {strides = array<i32>} : memref<8x64xf32, #tpu.memory_space<vmem>>, vector<8x64xf32>,
    %c3_i32 = arith.constant 3 : i32
    %175 = arith.cmpi eq, %arg1, %c3_i32 : i32
    %176 = arith.extui %175 : i1 to i32
    %c0_i32_73 = arith.constant 0 : i32
    %177 = arith.cmpi ne, %176, %c0_i32_73 : i32
    scf.if %177 {
      %c0_74 = arith.constant 0 : index
      %c0_75 = arith.constant 0 : index
      %178 = vector.load %arg9[%c0_74, %c0_75] : memref<8x64xf32, #tpu.memory_space<vmem>>, vector<8x64xf32>
      tpu.vector_store %arg9[%c0_74, %c0_75], %173 {strides = array<i32>} : memref<8x64xf32, #tpu.memory_space<vmem>>, vector<8x64xf32>,
    } else {
    }
    return
  }
  func.func @transform_0(%arg0: i32, %arg1: i32) -> (i32, i32) {
    %c0_i32 = arith.constant 0 : i32
    %c0_i32_0 = arith.constant 0 : i32
    return %arg0, %c0_i32 : i32, i32
  }
  func.func @transform_1(%arg0: i32, %arg1: i32) -> (i32, i32) {
    %c0_i32 = arith.constant 0 : i32
    %c0_i32_0 = arith.constant 0 : i32
    %c0_i32_1 = arith.constant 0 : i32
    return %c0_i32, %c0_i32_0 : i32, i32
  }
  func.func @transform_2(%arg0: i32, %arg1: i32) -> (i32, i32, i32) {
    %c0_i32 = arith.constant 0 : i32
    %c0_i32_0 = arith.constant 0 : i32
    %c0_i32_1 = arith.constant 0 : i32
    return %arg1, %c0_i32, %c0_i32_0 : i32, i32, i32
  }
  func.func @transform_3(%arg0: i32, %arg1: i32) -> (i32, i32, i32) {
    %c0_i32 = arith.constant 0 : i32
    %c0_i32_0 = arith.constant 0 : i32
    %c0_i32_1 = arith.constant 0 : i32
    return %arg1, %c0_i32, %c0_i32_0 : i32, i32, i32
  }
  func.func @transform_4(%arg0: i32, %arg1: i32) -> (i32, i32, i32) {
    %c0_i32 = arith.constant 0 : i32
    %c0_i32_0 = arith.constant 0 : i32
    %c0_i32_1 = arith.constant 0 : i32
    return %arg1, %c0_i32, %c0_i32_0 : i32, i32, i32
  }
  func.func @transform_5(%arg0: i32, %arg1: i32) -> (i32, i32, i32) {
    %c0_i32 = arith.constant 0 : i32
    %c0_i32_0 = arith.constant 0 : i32
    %c0_i32_1 = arith.constant 0 : i32
    return %arg1, %c0_i32, %c0_i32_0 : i32, i32, i32
  }
  func.func @transform_6(%arg0: i32, %arg1: i32) -> (i32, i32, i32) {
    %c0_i32 = arith.constant 0 : i32
    %c0_i32_0 = arith.constant 0 : i32
    %c0_i32_1 = arith.constant 0 : i32
    return %arg1, %c0_i32, %c0_i32_0 : i32, i32, i32
  }
  func.func @transform_7(%arg0: i32, %arg1: i32) -> (i32, i32) {
    %c0_i32 = arith.constant 0 : i32
    %c0_i32_0 = arith.constant 0 : i32
    return %arg0, %c0_i32 : i32, i32
  }
}

</mosaic_0001>

<bundles_post_ra>
// kernel: music_encoder_forward.2
= control target key start
LH: loop header
LB: loop body
LE: loop exit
PB: predicated region body
PF: predicated region fallthrough
CT: control target
= control target key end

     0   :  { %v223_v0 = vmov 0.0   ;;  %vm224_vm0 = vmmov 0   ;;  %vm50_vm1 = vcmask 261120   ;;  %vm127_vm2 = vcmask 392192   ;;  %s296_s2 = inlined_call_operand.vmem [shape: bf16[32,48], index: 2, kind: input, shape index: {}]   ;;  %s297_s0 = inlined_call_operand.vmem [shape: f32[16,32], index: 0, kind: input, shape index: {}]   ;;  %s298_s4 = inlined_call_operand.vmem [shape: bf16[48,64], index: 4, kind: input, shape index: {}]   ;;  %s299_s3 = inlined_call_operand.vmem [shape: f32[1,48], index: 3, kind: input, shape index: {}]   ;;  %s300_s5 = inlined_call_operand.vmem [shape: f32[1,64], index: 5, kind: input, shape index: {}]   ;;  %s301_s1 = inlined_call_operand.vmem [shape: f32[8,64], index: 1, kind: input, shape index: {}]   ;;  %s302_s6 = inlined_call_operand.vmem [shape: f32[16,64], index: 6, kind: output, shape index: {}]  }
   0x1   :  { %198 = vmatprep.subr.bf16.mxu0 %v223_v0  ;;  %v218_v1 = vld [vmem:[%s296_s2 + $0x8] sm:$0xff]   ;;  %202 = vmatprep.mubr.msk.bf16.mxu0 %vm224_vm0, %v223_v0  ;;  %v219_v2 = vld [vmem:[%s296_s2] sm:$0xff]   ;;  %v220_v5 = vld [vmem:[%s298_s4 + $0x10] sm:$0xff]   ;;  %vm174_vm3 = vcmask 523264  }
   0x2   :  { %206 = vmatprep.subr.bf16.mxu1 %v223_v0  ;;  %212 = vmatprep.mubr.msk.bf16.mxu1 %vm224_vm0, %v223_v0  ;;  %v24_v3 = vld [vmem:[%s297_s0] sm:$0xff]  ;;  %v25_v4 = vld [vmem:[%s297_s0 + $0x8] sm:$0xff] }
   0x3   :  { %199 = vmatpush3.bf16.msra.mxu0 %v218_v1  ;;  %v26_v6 = vpack.c.bf16 %v25_v4, %v24_v3  ;;  %207 = vmatpush3.bf16.msra.mxu1 %v220_v5  ;;  %v221_v7 = vld [vmem:[%s298_s4 + $0x8] sm:$0xff]   ;;  %v222_v8 = vld [vmem:[%s298_s4] sm:$0xff]  }
   0x4   :  { %200 = vmatprep.subr.bf16.mxu0 %v223_v0  ;;  %208 = vmatprep.subr.bf16.mxu1 %v223_v0  ;;  %v182_v10 = vld [vmem:[%s299_s3] ss:$0 sm:$0xff] }
   0x5   :  { %v186_v17 = vld [vmem:[%s300_s5] ss:$0 sm:$0xff] }
   0x6   :  { %v172_v19 = vld [vmem:[%s301_s1] sm:$0xff] }
   0x7   :  { %201 = vmatpush3.bf16.msra.mxu0 %v219_v2  ;;  %209 = vmatpush3.bf16.msra.mxu1 %v221_v7 }
   0x8   :  { %210 = vmatprep.subr.bf16.mxu1 %v223_v0 }
   0xa   :  { %203 = vmatmul.mubr.msk.bf16.vlgmr.msra.gmra.mxu0 %vm50_vm1, %v26_v6 }
   0xb   :  { %211 = vmatpush3.bf16.msra.mxu1 %v222_v8 }
  0xca   :  { %v88_v9 = vpop.f32.mrf.mxu0 }
  0xcb   :  { %v89_v13 = vadd.f32 %v182_v10, %v88_v9 }
  0xcc   :  { %v204_v11 = vpop.f32.mrf.mxu0 }
  0xce   :  { %v91_v12 = vpop.f32.mrf.mxu0 }
  0xcf   :  { %v92_v14 = vadd.f32 %v182_v10, %v91_v12 }
  0xd0   :  { %v205_v15 = vpop.f32.mrf.mxu0 }
  0xd1   :  { %v95_v16 = vpack.c.bf16 %v92_v14, %v89_v13 }
  0xd3   :  { %213 = vmatmul.mubr.msk.bf16.vlgmr.msra.gmra.mxu1 %vm127_vm2, %v95_v16 }
 0x193   :  { %v165_v18 = vpop.f32.mrf.mxu1 }
 0x194   :  { %v166_v20 = vadd.f32 %v186_v17, %v165_v18 }
 0x195   :  { %v214_v21 = vpop.f32.mrf.mxu1 }
 0x196   :  { %v173_v22 = vadd.f32 %v172_v19, %v166_v20 }
 0x197   :  { %v168_v23 = vpop.f32.mrf.mxu1 }
 0x198   :  { %175 = vst.msk [vmem:[%s302_s6] sm:$0xff] %vm174_vm3, %v173_v22  ;;  %v169_v24 = vadd.f32 %v186_v17, %v168_v23 }
 0x199   :  { %v215_v25 = vpop.f32.mrf.mxu1 }
 0x19a   :  { %v176_v26 = vadd.f32 %v172_v19, %v169_v24 }
 0x19c   :  { %177 = vst.msk [vmem:[%s302_s6 + $0x8] sm:$0xff] %vm174_vm3, %v176_v26 }

// kernel: music_encoder_forward.3
= control target key start
LH: loop header
LB: loop body
LE: loop exit
PB: predicated region body
PF: predicated region fallthrough
CT: control target
= control target key end

     0   :  { %s2167_s0 = inlined_call_operand.vmem [shape: f32[16,64], index: 0, kind: input, shape index: {}]   ;;  %s2168_s1 = inlined_call_operand.vmem [shape: f32[8,8], index: 1, kind: input, shape index: {}]   ;;  %s2169_s2 = inlined_call_operand.vmem [shape: bf16[4,64,192], index: 2, kind: input, shape index: {}]   ;;  %s2170_s3 = inlined_call_operand.vmem [shape: bf16[4,64,64], index: 3, kind: input, shape index: {}]   ;;  %s2171_s4 = inlined_call_operand.vmem [shape: bf16[4,64,128], index: 4, kind: input, shape index: {}]   ;;  %s2172_s5 = inlined_call_operand.vmem [shape: bf16[4,128,64], index: 5, kind: input, shape index: {}]   ;;  %s2173_s6 = inlined_call_operand.vmem [shape: f32[4,8,192], index: 6, kind: input, shape index: {}]   ;;  %s2174_s7 = inlined_call_operand.hbm [shape: f32[16,64], index: 7, kind: output, shape index: {}]  }
   0x1   :  { %2184 = sst [smem:[#allocation16_spill]] %s2167_s0 }
   0x2   :  { %12 = vsyncpa [#allocation5], 0 }
   0x3   :  { %14 = vsyncpa [#allocation5 + $0x1], 0  ;;  %s1880_s24 = smov 0   ;;  %s1882_s25 = smov 0  }
   0x4   :  { %s1884_s26 = smov 0   ;;  %s1886_s27 = smov 0  }
   0x5   :  { %s1888_s28 = smov 0   ;;  %s1890_s29 = smov 0  }
   0x6   :  { %s1892_s30 = smov 0   ;;  %s1894_s8 = smov 0  }
   0x7 LB: > { %2185 = sst [smem:[#allocation7_spill]] %s1799_s24  ;;  %s1416_s9 = sadd.s32 4294967295, %s1827_s8   ;;  %s1827_s8 = sphi %s1894_s8, %s20_s8   ;;  %s1823_s30 = sphi %s1892_s30, %s2206_s30   ;;  %s1819_s29 = sphi %s1890_s29, %s2205_s29   ;;  %s1815_s28 = sphi %s1888_s28, %s2204_s28   ;;  %s1811_s27 = sphi %s1886_s27, %s2203_s27   ;;  %s1807_s26 = sphi %s1884_s26, %s2202_s26   ;;  %s1803_s25 = sphi %s1882_s25, %s2208_s25   ;;  %s1799_s24 = sphi %s1880_s24, %s2207_s24  }
   0x8   : > { %2186 = sst [smem:[#allocation8_spill]] %s1807_s26  ;;  %s1417_s10 = sadd.s32 4294967294, %s1827_s8  }
   0x9   : > { %2187 = sst [smem:[#allocation9_spill]] %s1819_s29  ;;  %s29_s11 = sadd.s32 1, %s1819_s29 }
   0xa   : > { %2188 = sst [smem:[#allocation10_spill]] %s1823_s30  ;;  %p30_p0 = scmp.ge.s32.totalorder %s29_s11, 4 }
   0xb   : > { %2189 = sst [smem:[#allocation11_spill]] %s1827_s8  ;;  %s32_s12 = sadd.s32 1, %s1823_s30 }
   0xc   : > { %p226_p1 = scmp.ne.s32.totalorder %s1807_s26, %s1803_s25  ;;  %p227_p2 = scmp.eq.s32.totalorder %s1416_s9, 7 }
   0xd   : > { %s2210_s11 = smov (%p30_p0, %s29_s11), 0  ;;  %s2212_s12 = smov (!%p30_p0, %s32_s12), %s1823_s30 }
   0xe   : > { %2190 = sst [smem:[#allocation12_spill]] %s2210_s11  ;;  %p1929_p3 = por %p227_p2, %p226_p1 }
   0xf   : > { %p232_p4 = scmp.ne.s32.totalorder %s1803_s25, %s1799_s24  ;;  %p34_p5 = scmp.ge.s32.totalorder %s2212_s12, 2 }
  0x10   : > { %p233_p6 = scmp.eq.s32.totalorder %s1417_s10, 7  ;;  %p1420_p7 = scmp.ge.s32.totalorder %s1827_s8, 1 }
  0x11   : > { %p301_p8 = scmp.lt.s32.totalorder %s1827_s8, 9  ;;  %s2214_s12 = smov (%p34_p5, %s2212_s12), 0 }
  0x12   : > { %2192 = sst [smem:[#allocation13_spill]] %s2214_s12  ;;  %p1939_p9 = por %p233_p6, %p232_p4 }
  0x13   : > { %p302_p10 = pnand %p1420_p7, %p301_p8  ;;  %s213_s15 = ssub.s32 %s1823_s30, %s2214_s12 }
  0x14   : > { %s2193_s14 = scalar_select %p1939_p9, 1, 0 }
  0x15   : > { %s216_s16 = sadd.s32 1, %s1807_s26  ;;  %p214_p11 = scmp.eq.s32.totalorder %s213_s15, 0 }
  0x16   : > { %2194 = sst [smem:[#allocation14_spill]] %s2193_s14  ;;  %305 = sbr.rel (%p302_p10) target bundleno = 2500 (0x9c4), region = 48 }
  0x17   : > { %s1947_s17 = scalar_select %p214_p11, %s1807_s26, %s216_s16  }
  0x18   : > { %s2178_s18 = sand.u32 (!%p302_p10), 1, %s1803_s25   ;;  %p357_p12 = scmp.lt.s32.totalorder (!%p302_p10), %s1815_s28, 1 }
  0x19   : > { %2195 = sst [smem:[#allocation15_spill]] %s1947_s17  ;;  %s1953_s19 = sshll.u32 (!%p302_p10), %s2178_s18, 3 }
  0x1a   : > { %p361_p13 = scmp.lt.s32.totalorder (!%p302_p10), %s1811_s27, 3  ;;  %s2196_s0 = sld [smem:[#allocation16_spill]] (!%p302_p10) }
  0x1b   : > { %s358_s20 = scalar_select %p357_p12, %s1815_s28, 1 }
  0x1c   : > { %s362_s21 = scalar_select %p361_p13, %s1811_s27, 3 }
  0x1d   : > { %s1422_s22 = sshll.u32 %s358_s20, 3  ;;  %p1433_p0 = scmp.ne.s32.totalorder %s1811_s27, 0 }
  0x1e   : > { %s1474_s15 = sshll.u32 %s362_s21, 6  ;;  %s1475_s30 = sshll.u32 %s362_s21, 5 }
  0x1f   : > { %s365_s11 = scalar_lea.vmem %s2169_s2, %s1474_s15  ;;  %s1967_s18 = scalar_lea.vmem %s2170_s3, %s1475_s30 }
  0x20   : > { %s360_s10 = scalar_lea.vmem %s2196_s0, %s1422_s22  ;;  %s1972_s24 = scalar_lea.vmem %s2171_s4, %s1475_s30 }
  0x21   : > { %s1977_s22 = scalar_lea.vmem %s2172_s5, %s1474_s15  ;;  %s1478_s23 = sshll.u32 %s362_s21, 4 }
  0x22   : > { %s1982_s16 = scalar_lea.vmem %s2173_s6, %s1478_s23  ;;  %s356_s0 = scalar_lea.vmem [#allocation4], %s1953_s19 }
  0x23   : > { %390 = sbr.rel (%p1433_p0) target bundleno = 42 (0x2a), region = 52 }
  0x28   : > { %v391_v0 = vld [vmem:[%s360_s10] sm:$0xff]  ;;  %vm392_vm0 = vcmask 523264  }
  0x29   : > { %393 = vst.msk [vmem:[#allocation2] sm:$0xff] %vm392_vm0, %v391_v0 }
  0x2a PF: > { %v1687_v1 = vld [vmem:[%s365_s11 + $0x34] ss:$8 sps:$4 sm:$0xff]   ;;  %v1689_v2 = vld [vmem:[%s365_s11 + $0x30] ss:$8 sps:$4 sm:$0xff]   ;;  %v1829_v3 = vmov 0   ;;  %vm463_vm1 = vcmask 523264   ;;  %v413_v12 = vlaneseq }
  0x2b   : > { %499 = vmatprep.mubr.bf16.mxu1 %v1829_v3  ;;  %475 = vmatprep.subr.bf16.mxu1 %v1687_v1  ;;  %v1690_v4 = vld [vmem:[%s365_s11 + $0x24] ss:$8 sps:$4 sm:$0xff]   ;;  %v1692_v5 = vld [vmem:[%s365_s11 + $0x20] ss:$8 sps:$4 sm:$0xff]   ;;  %v1693_v6 = vld [vmem:[%s365_s11 + $0x14] ss:$8 sps:$4 sm:$0xff]  }
  0x2c   : > { %476 = vmatpush1.bf16.msra.mxu1 %v1689_v2  ;;  %v1695_v7 = vld [vmem:[%s365_s11 + $0x10] ss:$8 sps:$4 sm:$0xff]   ;;  %v1696_v8 = vld [vmem:[%s365_s11 + $0x4] ss:$8 sps:$4 sm:$0xff]   ;;  %v1698_v9 = vld [vmem:[%s365_s11] ss:$8 sps:$4 sm:$0xff]  }
  0x2d   : > { %477 = vmatprep.subr.bf16.mxu1 %v1690_v4  ;;  %v414_v13 = vshrl.u32 %v413_v12, 7  ;;  %v1830_v14 = vmov 0.0   ;;  %v395_v16 = vld [vmem:[%s1982_s16] ss:$8 sm:$0x3]  ;;  %vm1831_vm2 = vmmov 0  }
  0x2e   : > { %1526 = vmatprep.subr.bf16.mxu0 %v1830_v14  ;;  %1528 = vmatprep.mubr.msk.bf16.mxu0 %vm1831_vm2, %v1830_v14  ;;  %s1832_s26 = smov 64   ;;  %s1833_s29 = smov 112   ;;  %vm516_vm3 = vcmask 130048   ;;  %vm579_vm4 = vcmask 1043456   ;;  %v512_v42 = vld [vmem:[%s2168_s1] sm:$0xff]  ;;  %vm563_vm5 = vcmask 64512  }
  0x2f   : > { %v415_v15 = vsub.s32 0, %v414_v13  ;;  %s1834_s30 = smov 48   ;;  %s1835_s8 = smov 32   ;;  %v419_v26 = vsub.s32 1, %v414_v13  ;;  %vm740_vm6 = vcmask 261248   ;;  %vm856_vm7 = vcmask 392448  }
  0x30   : > { %478 = vmatpush1.bf16.msra.mxu1 %v1692_v5  ;;  %v1986_v10 = vld [vmem:[#allocation2] sm:$0xff]  ;;  %s1836_s11 = smov 96   ;;  %s1837_s14 = smov 16   ;;  %vm972_vm8 = vcmask 523648  }
  0x31   : > { %479 = vmatprep.subr.bf16.mxu1 %v1693_v6  ;;  %v403_v11 = vpack.c.bf16 %v1986_v10, %v1986_v10  ;;  %v416_v17 = vrot.slane %v395_v16, %v415_v15  ;;  %s1838_s17 = smov 80   ;;  %v420_v27 = vrot.slane %v395_v16, %v419_v26  ;;  %p1469_p1 = scmp.ne.s32.totalorder %s1811_s27, 3 }
  0x34   : > { %480 = vmatpush1.bf16.msra.mxu1 %v1695_v7 }
  0x35   : > { %481 = vmatprep.subr.bf16.mxu1 %v1696_v8 }
  0x38   : > { %482 = vmatpush1.bf16.msra.mxu1 %v1698_v9 }
  0x39   : > { %1514 = vmatprep.subr.bf16.mxu1 %v1830_v14 }
  0x3b   : > { %1442 = vmatmul.mubr.msk.bf16.vlgmr.msra.gmra.mxu1 %vm463_vm1, %v403_v11 }
  0x3c   : > { %1516 = vmatprep.mubr.msk.bf16.mxu1 %vm1831_vm2, %v1830_v14 }
  0xfb   : > { %v501_v18 = vpop.f32.mrf.mxu1 }
  0xfc   : > { %v502_v19 = vadd.f32 %v501_v18, %v416_v17 }
  0xfd   : > { %v503_v20 = vpop.f32.mrf.mxu1 }
  0xfe   : > { %v508_v21 = vmul.f32 0.25, %v502_v19  ;;  %v510_v22 = vpack.c.bf16 %v502_v19, %v502_v19  ;;  %v504_v29 = vadd.f32 %v503_v20, %v420_v27 }
  0xff   : > { %v505_v23 = vpop.f32.mrf.mxu1 }
 0x100   : > { %v509_v24 = vpack.c.bf16 %v508_v21, %v508_v21  ;;  %514 = vrot.lane.b32.xlu0 %v510_v22, %s1832_s26  ;;  %v2006_v33 = vpack.c.bf16 %v504_v29, %v504_v29 }
 0x101   : > { %v506_v25 = vpop.f32.mrf.mxu1 }
 0x102   : > { %625 = vrot.lane.b32.xlu1 %v509_v24, %s1833_s29  ;;  %v581_v35 = vsel %vm579_vm4, %v2006_v33, 0 }
 0x104   : > { %627 = vrot.lane.b32.xlu0 %v510_v22, %s1834_s30 }
 0x106   : > { %744 = vrot.lane.b32.xlu1 %v510_v22, %s1835_s8 }
 0x108   : > { %742 = vrot.lane.b32.xlu0 %v509_v24, %s1836_s11 }
 0x10a   : > { %860 = vrot.lane.b32.xlu1 %v510_v22, %s1837_s14 }
 0x10c   : > { %858 = vrot.lane.b32.xlu0 %v509_v24, %s1838_s17 }
 0x172   : > { %v515_v28 = vpop.permute.xlu0 %514 }
 0x173   : > { %v521_v30 = vsel %vm516_vm3, %v515_v28, 0 }
 0x174   : > { %1515 = vmatpush3.bf16.xpose.msra.mxu1 %v521_v30  ;;  %v626_v31 = vpop.permute.xlu1 %625 }
 0x175   : > { %1520 = vmatprep.subr.bf16.mxu1 %v1830_v14 }
 0x176   : > { %v628_v32 = vpop.permute.xlu0 %627 }
 0x177   : > { %v633_v34 = vsel %vm516_vm3, %v628_v32, 0 }
 0x178   : > { %1527 = vmatpush3.bf16.xpose.msra.mxu0 %v633_v34  ;;  %v745_v36 = vpop.permute.xlu1 %744 }
 0x179   : > { %1538 = vmatprep.subr.bf16.mxu0 %v1830_v14  ;;  %v750_v37 = vsel %vm516_vm3, %v745_v36, 0 }
 0x17a   : > { %v743_v39 = vpop.permute.xlu0 %742 }
 0x17b   : > { %1517 = vmatmul.mubr.msk.bf16.vlgmr.msra.gmra.mxu1 %vm516_vm3, %v509_v24 }
 0x17c   : > { %1521 = vmatpush3.bf16.msra.mxu1 %v581_v35  ;;  %1522 = vmatprep.mubr.msk.bf16.mxu1 %vm1831_vm2, %v1830_v14  ;;  %v861_v38 = vpop.permute.xlu1 %860 }
 0x17d   : > { %1532 = vmatprep.subr.bf16.mxu1 %v1830_v14  ;;  %v866_v40 = vsel %vm516_vm3, %v861_v38, 0 }
 0x17e   : > { %v859_v41 = vpop.permute.xlu0 %858 }
 0x17f   : > { %1529 = vmatmul.mubr.msk.bf16.vlgmr.msra.gmra.mxu0 %vm516_vm3, %v626_v31 }
 0x180   : > { %1539 = vmatpush3.bf16.xpose.msra.mxu0 %v750_v37  ;;  %1540 = vmatprep.mubr.msk.bf16.mxu0 %vm1831_vm2, %v1830_v14 }
 0x181   : > { %1550 = vmatprep.subr.bf16.mxu0 %v1830_v14 }
 0x187   : > { %1541 = vmatmul.mubr.msk.bf16.vlgmr.msra.gmra.mxu0 %vm516_vm3, %v743_v39 }
 0x188   : > { %1551 = vmatpush3.bf16.xpose.msra.mxu0 %v866_v40  ;;  %1552 = vmatprep.mubr.msk.bf16.mxu0 %vm1831_vm2, %v1830_v14 }
 0x189   : > { %1562 = vmatprep.subr.bf16.mxu0 %v1830_v14 }
 0x18f   : > { %1553 = vmatmul.mubr.msk.bf16.vlgmr.msra.gmra.mxu0 %vm516_vm3, %v859_v41 }
 0x190   : > { %1570 = vmatprep.mubr.msk.bf16.mxu0 %vm1831_vm2, %v1830_v14 }
 0x23b   : > { %v557_v43 = vpop.f32.mrf.mxu1 }
 0x23c   : > { %v558_v44 = vadd.f32 %v557_v43, %v512_v42 }
 0x23d   : > { %v1518_v45 = vpop.f32.mrf.mxu1 }
 0x23e   : > { %v564_v46 = vsel %vm563_vm5, %v558_v44, -inf }
 0x23f   : > { %v669_v47 = vpop.f32.mrf.mxu0  ;;  %565 = vmax.xlane.f32.xlu1 %v564_v46  ;;  %v560_v48 = vpop.f32.mrf.mxu1 }
 0x240   : > { %v670_v49 = vadd.f32 %v669_v47, %v512_v42 }
 0x241   : > { %v1519_v50 = vpop.f32.mrf.mxu1  ;;  %v1530_v51 = vpop.f32.mrf.mxu0 }
 0x242   : > { %v675_v52 = vsel %vm563_vm5, %v670_v49, -inf  ;;  %v1699_v50 = vld [vmem:[%s1967_s18 + $0x18] sm:$0xff]  }
 0x243   : > { %676 = vmax.xlane.f32.xlu0 %v675_v52  ;;  %v672_v53 = vpop.f32.mrf.mxu0  ;;  %1563 = vmatpush3.bf16.msra.mxu0 %v1699_v50  ;;  %v1700_v52 = vld [vmem:[%s1967_s18 + $0x10] sm:$0xff]  }
 0x244   : > { %1564 = vmatprep.subr.bf16.mxu0 %v1830_v14 }
 0x245   : > { %v1531_v54 = vpop.f32.mrf.mxu0 }
 0x247   : > { %v786_v55 = vpop.f32.mrf.mxu0  ;;  %1565 = vmatpush3.bf16.msra.mxu0 %v1700_v52  ;;  %v400_v52 = vld [vmem:[%s1982_s16 + $0x5] ss:$0 sm:$0xff] }
 0x248   : > { %v787_v56 = vadd.f32 %v786_v55, %v512_v42  ;;  %1566 = vmatprep.subr.bf16.mxu0 %v1830_v14 }
 0x249   : > { %v1542_v57 = vpop.f32.mrf.mxu0 }
 0x24a   : > { %v792_v58 = vsel %vm563_vm5, %v787_v56, -inf }
 0x24b   : > { %793 = vmax.xlane.f32.xlu0 %v792_v58  ;;  %v789_v59 = vpop.f32.mrf.mxu0 }
 0x24d   : > { %v1543_v60 = vpop.f32.mrf.mxu0 }
 0x24f   : > { %v902_v61 = vpop.f32.mrf.mxu0 }
 0x250   : > { %v903_v62 = vadd.f32 %v902_v61, %v512_v42  ;;  %v1701_v61 = vld [vmem:[%s1967_s18 + $0x8] sm:$0xff]  }
 0x251   : > { %v1554_v63 = vpop.f32.mrf.mxu0  ;;  %1567 = vmatpush3.bf16.msra.mxu0 %v1701_v61 }
 0x252   : > { %v908_v0 = vsel %vm563_vm5, %v903_v62, -inf  ;;  %1568 = vmatprep.subr.bf16.mxu0 %v1830_v14 }
 0x253   : > { %v905_v1 = vpop.f32.mrf.mxu0  ;;  %909 = vmax.xlane.f32.xlu1 %v908_v0 }
 0x255   : > { %v1555_v2 = vpop.f32.mrf.mxu0 }
 0x2c8   : > { %v566_v3 = vpop.xlane.xlu1 %565 }
 0x2c9   : > { %v567_v4 = vsub.f32 %v558_v44, %v566_v3 }
 0x2cb   : > { %v568_v5 = vmul.f32 1.442695, %v567_v4 }
 0x2cc   : > { %v677_v6 = vpop.xlane.xlu0 %676 }
 0x2cd   : > { %1715 = vpow2.f32 %v568_v5  ;;  %v678_v7 = vsub.f32 %v670_v49, %v677_v6 }
 0x2cf   : > { %v679_v8 = vmul.f32 1.442695, %v678_v7 }
 0x2d1   : > { %1717 = vpow2.f32 %v679_v8  ;;  %v396_v8 = vld [vmem:[%s1982_s16 + $0x1] ss:$0 sm:$0xff] }
 0x2d4   : > { %v794_v9 = vpop.xlane.xlu0 %793 }
 0x2d5   : > { %v795_v11 = vsub.f32 %v787_v56, %v794_v9 }
 0x2d7   : > { %v796_v12 = vmul.f32 1.442695, %v795_v11 }
 0x2d9   : > { %1719 = vpow2.f32 %v796_v12 }
 0x2da   : > { %v1716_v13 = vpop.eup %1715 }
 0x2db   : > { %v570_v15 = vsel %vm563_vm5, %v1716_v13, 0.0 }
 0x2dc   : > { %571 = vadd.xlane.f32.xlu0 %v570_v15  ;;  %v910_v20 = vpop.xlane.xlu1 %909 }
 0x2dd   : > { %v911_v21 = vsub.f32 %v903_v62, %v910_v20  ;;  %v1702_v62 = vld [vmem:[%s1967_s18] sm:$0xff]  }
 0x2de   : > { %v1718_v16 = vpop.eup %1717  ;;  %1569 = vmatpush3.bf16.msra.mxu0 %v1702_v62 }
 0x2df   : > { %v681_v17 = vsel %vm563_vm5, %v1718_v16, 0.0  ;;  %v912_v22 = vmul.f32 1.442695, %v911_v21  ;;  %1586 = vmatprep.subr.bf16.mxu0 %v1830_v14 }
 0x2e0   : > { %682 = vadd.xlane.f32.xlu1 %v681_v17 }
 0x2e1   : > { %1721 = vpow2.f32 %v912_v22 }
 0x2e6   : > { %v1720_v18 = vpop.eup %1719 }
 0x2e7   : > { %v798_v19 = vsel %vm563_vm5, %v1720_v18, 0.0 }
 0x2e8   : > { %799 = vadd.xlane.f32.xlu0 %v798_v19 }
 0x2ee   : > { %v1722_v23 = vpop.eup %1721 }
 0x2ef   : > { %v914_v24 = vsel %vm563_vm5, %v1722_v23, 0.0 }
 0x2f1   : > { %804 = vrot.lane.b32.xlu1 %v2006_v33, %s1836_s11 }
 0x2fe   : > { %688 = vrot.lane.b32.xlu0 %v2006_v33, %s1833_s29 }
 0x315   : > { %915 = vadd.xlane.f32.xlu1 %v914_v24  ;;  %v1705_v24 = vld [vmem:[%s1972_s24 + $0x8] sm:$0xff]  }
 0x326   : > { %920 = vrot.lane.b32.xlu1 %v2006_v33, %s1838_s17 }
 0x365   : > { %v572_v25 = vpop.xlane.xlu0 %571 }
 0x366   : > { %1723 = vrcp.f32 %v572_v25  ;;  %v1706_v25 = vld [vmem:[%s1972_s24] sm:$0xff]  }
 0x369   : > { %v683_v26 = vpop.xlane.xlu1 %682 }
 0x36a   : > { %1725 = vrcp.f32 %v683_v26  ;;  %v1707_v26 = vld [vmem:[%s1977_s22 + $0x38] sm:$0xff]  }
 0x36d   : > { %v805_v35 = vpop.permute.xlu1 %804 }
 0x36e   : > { %v810_v38 = vsel %vm579_vm4, %v805_v35, 0 }
 0x371   : > { %v800_v27 = vpop.xlane.xlu0 %799 }
 0x372   : > { %1727 = vrcp.f32 %v800_v27  ;;  %v1708_v27 = vld [vmem:[%s1977_s22 + $0x30] sm:$0xff]  }
 0x373   : > { %v1724_v28 = vpop.eup %1723 }
 0x374   : > { %v574_v29 = vmul.f32 %v1724_v28, %v1716_v13  ;;  %v1709_v28 = vld [vmem:[%s1977_s22 + $0x28] sm:$0xff]  }
 0x375   : > { %v689_v30 = vpop.permute.xlu0 %688 }
 0x376   : > { %v694_v31 = vsel %vm579_vm4, %v689_v30, 0  ;;  %v575_v32 = vpack.c.bf16 %v574_v29, %v574_v29  ;;  %v1710_v29 = vld [vmem:[%s1977_s22 + $0x20] sm:$0xff]   ;;  %v1711_v30 = vld [vmem:[%s1977_s22 + $0x18] sm:$0xff]  }
 0x377   : > { %v1726_v34 = vpop.eup %1725 }
 0x378   : > { %1523 = vmatmul.mubr.msk.bf16.vlgmr.msra.gmra.mxu1 %vm563_vm5, %v575_v32  ;;  %v685_v33 = vmul.f32 %v1726_v34, %v1718_v16 }
 0x379   : > { %1533 = vmatpush3.bf16.msra.mxu1 %v694_v31  ;;  %1534 = vmatprep.mubr.msk.bf16.mxu1 %vm1831_vm2, %v1830_v14  ;;  %v1712_v31 = vld [vmem:[%s1977_s22 + $0x10] sm:$0xff]  }
 0x37a   : > { %1544 = vmatprep.subr.bf16.mxu1 %v1830_v14  ;;  %v686_v36 = vpack.c.bf16 %v685_v33, %v685_v33 }
 0x37f   : > { %v1728_v37 = vpop.eup %1727 }
 0x380   : > { %1535 = vmatmul.mubr.msk.bf16.vlgmr.msra.gmra.mxu1 %vm563_vm5, %v686_v36  ;;  %v802_v39 = vmul.f32 %v1728_v37, %v1720_v18  ;;  %v397_v36 = vld [vmem:[%s1982_s16 + $0x2] ss:$0 sm:$0xff] }
 0x381   : > { %1545 = vmatpush3.bf16.msra.mxu1 %v810_v38  ;;  %1546 = vmatprep.mubr.msk.bf16.mxu1 %vm1831_vm2, %v1830_v14  ;;  %v398_v38 = vld [vmem:[%s1982_s16 + $0x3] ss:$0 sm:$0xff] }
 0x382   : > { %1556 = vmatprep.subr.bf16.mxu1 %v1830_v14  ;;  %v803_v40 = vpack.c.bf16 %v802_v39, %v802_v39 }
 0x388   : > { %1547 = vmatmul.mubr.msk.bf16.vlgmr.msra.gmra.mxu1 %vm563_vm5, %v803_v40 }
 0x389   : > { %1558 = vmatprep.mubr.msk.bf16.mxu1 %vm1831_vm2, %v1830_v14 }
 0x39e   : > { %v916_v41 = vpop.xlane.xlu1 %915 }
 0x39f   : > { %1729 = vrcp.f32 %v916_v41 }
 0x3a2   : > { %v921_v42 = vpop.permute.xlu1 %920 }
 0x3a3   : > { %v926_v43 = vsel %vm579_vm4, %v921_v42, 0  ;;  %v1713_v42 = vld [vmem:[%s1977_s22 + $0x8] sm:$0xff]  }
 0x3a4   : > { %1557 = vmatpush3.bf16.msra.mxu1 %v926_v43  ;;  %v1714_v43 = vld [vmem:[%s1977_s22] sm:$0xff]  }
 0x3a5   : > { %1574 = vmatprep.subr.bf16.mxu1 %v1830_v14 }
 0x3ac   : > { %v1730_v44 = vpop.eup %1729 }
 0x3ad   : > { %v918_v45 = vmul.f32 %v1730_v44, %v1722_v23  ;;  %v1703_v23 = vld [vmem:[%s1972_s24 + $0x18] sm:$0xff]   ;;  %v399_v44 = vld [vmem:[%s1982_s16 + $0x4] ss:$0 sm:$0xff] }
 0x3af   : > { %v919_v46 = vpack.c.bf16 %v918_v45, %v918_v45 }
 0x3b1   : > { %1559 = vmatmul.mubr.msk.bf16.vlgmr.msra.gmra.mxu1 %vm563_vm5, %v919_v46 }
 0x3b2   : > { %1582 = vmatprep.mubr.msk.bf16.mxu1 %vm1831_vm2, %v1830_v14  ;;  %1575 = vmatpush3.bf16.msra.mxu1 %v1703_v23 }
 0x3b3   : > { %1576 = vmatprep.subr.bf16.mxu1 %v1830_v14 }
 0x438   : > { %v617_v47 = vpop.f32.mrf.mxu1 }
 0x439   : > { %623 = vst.msk [vmem:[#allocation3] sm:$0xff] %vm516_vm3, %v617_v47 }
 0x43a   : > { %v1524_v48 = vpop.f32.mrf.mxu1 }
 0x43c   : > { %v620_v49 = vpop.f32.mrf.mxu1 }
 0x43e   : > { %v1525_v51 = vpop.f32.mrf.mxu1 }
 0x440   : > { %v730_v53 = vpop.f32.mrf.mxu1 }
 0x441   : > { %737 = vrot.lane.b32.xlu0 %v730_v53, %s1837_s14 }
 0x442   : > { %v1536_v54 = vpop.f32.mrf.mxu1 }
 0x444   : > { %v733_v55 = vpop.f32.mrf.mxu1 }
 0x446   : > { %v1537_v56 = vpop.f32.mrf.mxu1 }
 0x448   : > { %v846_v57 = vpop.f32.mrf.mxu1 }
 0x449   : > { %853 = vrot.lane.b32.xlu1 %v846_v57, %s1835_s8 }
 0x44a   : > { %v1548_v58 = vpop.f32.mrf.mxu1 }
 0x44c   : > { %v849_v59 = vpop.f32.mrf.mxu1 }
 0x44e   : > { %v1549_v60 = vpop.f32.mrf.mxu1 }
 0x471   : > { %v962_v63 = vpop.f32.mrf.mxu1 }
 0x472   : > { %969 = vrot.lane.b32.xlu0 %v962_v63, %s1834_s30 }
 0x473   : > { %v1560_v0 = vpop.f32.mrf.mxu1 }
 0x475   : > { %v965_v1 = vpop.f32.mrf.mxu1 }
 0x477   : > { %v1561_v2 = vpop.f32.mrf.mxu1 }
 0x4b3   : > { %v738_v3 = vpop.permute.xlu0 %737 }
 0x4b4   : > { %741 = vst.msk [vmem:[#allocation3] sm:$0xff] %vm740_vm6, %v738_v3 }
 0x4bb   : > { %v854_v4 = vpop.permute.xlu1 %853 }
 0x4bc   : > { %857 = vst.msk [vmem:[#allocation3] sm:$0xff] %vm856_vm7, %v854_v4  ;;  %v401_v4 = vld [vmem:[%s1982_s16 + $0x6] ss:$0 sm:$0xff] }
 0x4e4   : > { %v970_v5 = vpop.permute.xlu0 %969 }
 0x4e5   : > { %973 = vst.msk [vmem:[#allocation3] sm:$0xff] %vm972_vm8, %v970_v5 }
 0x4ec   : > { %v974_v6 = vld [vmem:[#allocation3] sm:$0xff] }
 0x4ed   : > { %v975_v7 = vpack.c.bf16 %v974_v6, %v974_v6  ;;  %v402_v6 = vld [vmem:[%s1982_s16 + $0x7] ss:$0 sm:$0xff] }
 0x4ef   : > { %1571 = vmatmul.mubr.msk.bf16.vlgmr.msra.gmra.mxu0 %vm463_vm1, %v975_v7 }
 0x4f0   : > { %1602 = vmatprep.mubr.msk.bf16.mxu0 %vm1831_vm2, %v1830_v14  ;;  %1587 = vmatpush3.bf16.msra.mxu0 %v1707_v26 }
 0x4f1   : > { %1588 = vmatprep.subr.bf16.mxu0 %v1830_v14 }
 0x4f4   : > { %1589 = vmatpush3.bf16.msra.mxu0 %v1708_v27 }
 0x4f5   : > { %1590 = vmatprep.subr.bf16.mxu0 %v1830_v14 }
 0x4f8   : > { %1591 = vmatpush3.bf16.msra.mxu0 %v1709_v28 }
 0x4f9   : > { %1592 = vmatprep.subr.bf16.mxu0 %v1830_v14 }
 0x4fc   : > { %1593 = vmatpush3.bf16.msra.mxu0 %v1710_v29 }
 0x4fd   : > { %1594 = vmatprep.subr.bf16.mxu0 %v1830_v14 }
 0x500   : > { %1595 = vmatpush3.bf16.msra.mxu0 %v1711_v30 }
 0x501   : > { %1596 = vmatprep.subr.bf16.mxu0 %v1830_v14 }
 0x504   : > { %1597 = vmatpush3.bf16.msra.mxu0 %v1712_v31 }
 0x505   : > { %1598 = vmatprep.subr.bf16.mxu0 %v1830_v14 }
 0x508   : > { %1599 = vmatpush3.bf16.msra.mxu0 %v1713_v42 }
 0x509   : > { %1600 = vmatprep.subr.bf16.mxu0 %v1830_v14 }
 0x50c   : > { %1601 = vmatpush3.bf16.msra.mxu0 %v1714_v43 }
 0x5af   : > { %v1045_v9 = vpop.f32.mrf.mxu0 }
 0x5b0   : > { %v1046_v11 = vadd.f32 %v1045_v9, %v396_v8 }
 0x5b1   : > { %v1572_v12 = vpop.f32.mrf.mxu0 }
 0x5b2   : > { %v1051_v13 = vadd.f32 %v1046_v11, %v1986_v10  ;;  %v1704_v10 = vld [vmem:[%s1972_s24 + $0x10] sm:$0xff]  }
 0x5b3   : > { %v1048_v15 = vpop.f32.mrf.mxu0  ;;  %1577 = vmatpush3.bf16.msra.mxu1 %v1704_v10 }
 0x5b4   : > { %v1052_v16 = vsel %vm463_vm1, %v1051_v13, 0.0  ;;  %1578 = vmatprep.subr.bf16.mxu1 %v1830_v14 }
 0x5b5   : > { %1053 = vadd.xlane.f32.xlu1 %v1052_v16  ;;  %v1573_v17 = vpop.f32.mrf.mxu0 }
 0x5b7   : > { %1579 = vmatpush3.bf16.msra.mxu1 %v1705_v24 }
 0x5b8   : > { %1580 = vmatprep.subr.bf16.mxu1 %v1830_v14 }
 0x5bb   : > { %1581 = vmatpush3.bf16.msra.mxu1 %v1706_v25 }
 0x63e   : > { %v1054_v18 = vpop.xlane.xlu1 %1053 }
 0x63f   : > { %v1056_v19 = vmul.f32 0.015625, %v1054_v18 }
 0x641   : > { %v1057_v20 = vsub.f32 %v1051_v13, %v1056_v19 }
 0x643   : > { %v1058_v21 = vmul.f32 %v1057_v20, %v1057_v20 }
 0x645   : > { %v1059_v22 = vsel %vm463_vm1, %v1058_v21, 0.0 }
 0x646   : > { %1060 = vadd.xlane.f32.xlu0 %v1059_v22 }
 0x6cf   : > { %v1061_v32 = vpop.xlane.xlu0 %1060 }
 0x6d0   : > { %v1062_v34 = vmul.f32 0.015625, %v1061_v32 }
 0x6d2   : > { %v1063_v33 = vadd.f32 1e-05, %v1062_v34 }
 0x6d4   : > { %1731 = vrsqrt.f32 %v1063_v33 }
 0x6e1   : > { %v1732_v35 = vpop.eup %1731 }
 0x6e2   : > { %v1065_v37 = vmul.f32 %v1732_v35, %v1057_v20 }
 0x6e4   : > { %v1066_v39 = vmul.f32 %v1065_v37, %v397_v36 }
 0x6e6   : > { %v1067_v40 = vadd.f32 %v1066_v39, %v398_v38 }
 0x6e8   : > { %v1068_v41 = vpack.c.bf16 %v1067_v40, %v1067_v40 }
 0x6ea   : > { %1583 = vmatmul.mubr.msk.bf16.vlgmr.msra.gmra.mxu1 %vm463_vm1, %v1068_v41 }
 0x7aa   : > { %v1138_v45 = vpop.f32.mrf.mxu1 }
 0x7ab   : > { %v1139_v46 = vadd.f32 %v1138_v45, %v399_v44 }
 0x7ac   : > { %v1584_v47 = vpop.f32.mrf.mxu1 }
 0x7ad   : > { %v1144_v48 = vmax.f32 %v1139_v46, 0.0 }
 0x7ae   : > { %v1141_v49 = vpop.f32.mrf.mxu1 }
 0x7af   : > { %v1145_v50 = vpack.c.bf16 %v1144_v48, %v1144_v48 }
 0x7b0   : > { %v1585_v51 = vpop.f32.mrf.mxu1 }
 0x7b1   : > { %1603 = vmatmul.mubr.bf16.vlgmr.msra.gmra.mxu0 %v1145_v50 }
 0x871   : > { %v1244_v53 = vpop.f32.mrf.mxu0 }
 0x872   : > { %v1245_v54 = vadd.f32 %v1244_v53, %v400_v52 }
 0x873   : > { %v1604_v55 = vpop.f32.mrf.mxu0 }
 0x874   : > { %v1250_v56 = vadd.f32 %v1245_v54, %v1067_v40 }
 0x875   : > { %v1247_v57 = vpop.f32.mrf.mxu0 }
 0x876   : > { %v1251_v14 = vsel %vm463_vm1, %v1250_v56, 0.0 }
 0x877   : > { %1252 = vadd.xlane.f32.xlu0 %v1251_v14  ;;  %v1605_v58 = vpop.f32.mrf.mxu0 }
 0x900   : > { %v1253_v59 = vpop.xlane.xlu0 %1252 }
 0x901   : > { %v1254_v60 = vmul.f32 0.015625, %v1253_v59 }
 0x903   : > { %v1255_v61 = vsub.f32 %v1250_v56, %v1254_v60 }
 0x905   : > { %v1256_v62 = vmul.f32 %v1255_v61, %v1255_v61 }
 0x907   : > { %v1257_v63 = vsel %vm463_vm1, %v1256_v62, 0.0 }
 0x908   : > { %1258 = vadd.xlane.f32.xlu1 %v1257_v63 }
 0x991   : > { %v1259_v0 = vpop.xlane.xlu1 %1258 }
 0x992   : > { %v1260_v1 = vmul.f32 0.015625, %v1259_v0 }
 0x994   : > { %v1261_v2 = vadd.f32 1e-05, %v1260_v1 }
 0x996   : > { %1733 = vrsqrt.f32 %v1261_v2 }
 0x9a3   : > { %v1734_v3 = vpop.eup %1733 }
 0x9a4   : > { %v1263_v5 = vmul.f32 %v1734_v3, %v1255_v61 }
 0x9a6   : > { %v1264_v7 = vmul.f32 %v1263_v5, %v401_v4  ;;  %1270 = sbr.rel (%p1469_p1) target bundleno = 2476 (0x9ac), region = 56 }
 0x9a8   : > { %v1265_v8 = vadd.f32 %v1264_v7, %v402_v6 }
 0x9aa   : > { %1266 = vst.msk [vmem:[#allocation2] sm:$0xff] %vm463_vm1, %v1265_v8 }
 0x9ab   : > { %1271 = vst.msk [vmem:[%s356_s0] sm:$0xff] %vm463_vm1, %v1265_v8 }
 0x9ac PF: > { %s1471_s24 = sshll.u32 %s1815_s28, 7  ;;  %s1286_s22 = sshll.u32 %s356_s0, 4  ;;  %s1287_s22 = int_to_ptr.vmem [resolvable:$true] %s1286_s22 }
 0x9ad   : > { %s1284_s20 = scalar_lea.hbm %s2174_s7, %s1471_s24  ;;  %s2197_s23 = sand.u32 1, %s1803_s25  }
 0x9ae   : > { %s1273_s27 = scalar_lea.sflag [#allocation5], %s2197_s23  ;;  %s1735_s9 = scalar_lea.vmem %s1287_s22, 128 }
 0x9af   : > { %p1736_p2 = scmp.ne.s32.totalorder %s1287_s22, %s1735_s9  ;;  %s1839_s12 = smov [#allocation4]  }
 0x9b0   : > { %s1739_s16 = sshll.u32 %s1839_s12, 4  ;;  %s1740_s16 = int_to_ptr.vmem [resolvable:$false] %s1739_s16 }
 0x9b1   : > { %p1737_p4 = pnand %p1736_p2, %p1929_p3  ;;  %s1741_s26 = scalar_lea.vmem %s1740_s16, 256 }
 0x9b2   : > { %p1742_p6 = scmp.lt.s32.totalorder %s1287_s22, %s1740_s16  ;;  %p1743_p7 = scmp.lt.s32.totalorder %s1741_s26, %s1735_s9 }
 0x9b3   : > { %p1738_p5 = pneg %p1737_p4 }
 0x9b4   : > { %p1744_p8 = por %p1743_p7, %p1742_p6 }
 0x9b6   : > { %p1745_p10 = pnand %p1744_p8, %p1738_p5 }
 0x9b8   : > { %1748 = shalt.err (!%p1745_p10)
}
 0x9b9   : > { %s1749_s28 = scalar_lea.hbm %s1284_s20, 128  ;;  %s1753_s29 = scalar_lea.hbm %s2174_s7, 256 }
 0x9ba   : > { %p1750_p11 = scmp.ne.s32.totalorder %s1284_s20, %s1749_s28  ;;  %p1754_p0 = scmp.lt.s32.totalorder %s1284_s20, %s2174_s7 }
 0x9bb   : > { %p1755_p1 = scmp.lt.s32.totalorder %s1753_s29, %s1749_s28 }
 0x9bc   : > { %p1751_p12 = pnand %p1750_p11, %p1929_p3 }
 0x9bd   : > { %p1756_p2 = por %p1755_p1, %p1754_p0 }
 0x9be   : > { %p1752_p13 = pneg %p1751_p12 }
 0x9c0   : > { %p1757_p4 = pnand %p1756_p2, %p1752_p13 }
 0x9c2   : > { %1760 = shalt.err (!%p1757_p4)
}
 0x9c3   : > { %1606 = dma.vmem_to_hbm [thread:$0]  (%p1929_p3), %s1287_s22, 128, %s1284_s20, %s1273_s27  }
 0x9c4 PF: > { %s2198_s11 = sld [smem:[#allocation11_spill]] }
 0x9c5   : > { %s2199_s14 = sld [smem:[#allocation7_spill]] }
 0x9ca   : > { %p1612_p5 = scmp.ge.s32.totalorder %s2198_s11, 2 }
 0x9cb   : > { %s1298_s21 = sand.u32 1, %s2199_s14  }
 0x9cc   : > { %p1609_p6 = pnand %p1612_p5, %p1939_p9  ;;  %s1299_s10 = scalar_lea.sflag [#allocation5], %s1298_s21 }
 0x9ce   : > { %p1610_p7 = pneg %p1609_p6 }
 0x9d0   : > { %1794 = dma.done.wait (%p1610_p7), %s1299_s10, 128  }
 0x9d1   : > { %1796 = vsyncadd (%p1610_p7), %s1299_s10, 4294967168  ;;  %s20_s8 = sadd.s32 1, %s2198_s11   ;;  %s2201_s18 = sld [smem:[#allocation8_spill]] }
 0x9d2   : > { %p17_p8 = scmp.ge.s32.totalorder %s20_s8, 10   ;;  %s2202_s26 = sld [smem:[#allocation15_spill]] }
 0x9d3   : > { %s2203_s27 = sld [smem:[#allocation9_spill]]  ;;  %s2207_s24 = smov %s1803_s25 }
 0x9d4   : > { %s2204_s28 = sld [smem:[#allocation10_spill]]  ;;  %19 = sbr.rel (!%p17_p8) target bundleno = 7 (0x7), region = 106 }
 0x9d5   : > { %s2205_s29 = sld [smem:[#allocation12_spill]] }
 0x9d6   : > { %s2206_s30 = sld [smem:[#allocation13_spill]] }
 0x9d7   : > { %s2208_s25 = smov %s2201_s18 }
 0x9d9   :  { %1304 = vsyncpa [#allocation5], 1 }
 0x9da   :  { %1306 = vsyncpa [#allocation5 + $0x1], 1 }

</bundles_post_ra>
